<compile_context>
chip_gen: v7x
topology: tpu7x:2x2x1
jax: 0.10.0
libtpu: 0.0.40
codegen_flags: <defaults>
</compile_context>

<pallas_src>
import functools

import jax
import jax.numpy as jnp
from jax.experimental import pallas as pl
from jax.experimental.pallas import tpu as pltpu

_LANE = 128      # output last dim is padded to this -> unmasked 128-lane stores
_SUBLANE = 8     # batch is padded to a multiple of this


def _linear_kernel(x_ref, w_ref, o_ref):
    """One Linear layer with the bias folded into the weight slab.

    x_ref: [Bp, IN]            activations (f32; bf16 if v5e operand mode)
    w_ref: [IN + 8, OUT_pad]   rows [0, IN) = W.T (lane-padded),
                               row IN = bias, remaining rows = 0
    o_ref: [Bp, OUT_pad]       lane-dense output slab
    """
    in_f = x_ref.shape[1]
    acc = jnp.dot(x_ref[...], w_ref[:in_f, :],
                  preferred_element_type=jnp.float32)            # MXU, f32 acc
    bias = w_ref[in_f:in_f + 1, :].astype(jnp.float32)           # [1, OUT_pad]
    o_ref[...] = (acc + bias).astype(o_ref.dtype)                # VPU add (f32)


def prepare_params(weight, bias, *, lane=_LANE, operand_dtype=jnp.float32):
    """One-time parameter prep (outside the forward path).

    weight: [OUT, IN] (PyTorch nn.Linear layout);  bias: [OUT]
    Returns a single slab w_prepped: [IN + 8, OUT_pad] with
      rows [0, IN) = W.T (transposed, lane-padded so OUT_pad % 128 == 0)
      row  IN      = bias
      everything else zero, so padded output lanes are exactly 0.
    On v5e pass operand_dtype=jnp.bfloat16 (bf16 MXU operands; accumulation and
    the bias add stay f32 inside the kernel).
    """
    out_f, in_f = weight.shape
    out_pad = max(lane, pl.cdiv(out_f, lane) * lane)
    rows = pl.cdiv(in_f + _SUBLANE, _SUBLANE) * _SUBLANE   # room for bias row
    w_slab = jnp.zeros((rows, out_pad), operand_dtype)
    w_slab = w_slab.at[:in_f, :out_f].set(
        jnp.transpose(weight).astype(operand_dtype))
    w_slab = w_slab.at[in_f, :out_f].set(bias.astype(operand_dtype))
    return w_slab


def _forward_slab_impl(features, w_prepped):
    """x @ W.T + b, returned as a lane-dense [Bp, OUT_pad] slab (no slice)."""
    b, in_f = features.shape
    rows, out_pad = w_prepped.shape
    assert rows >= in_f + 1 and out_pad % _LANE == 0

    # Sublane-align the batch (no-op for B % 8 == 0, e.g. B=8 here).  When a
    # pad is needed, allow_input_fusion below lets XLA fuse this producer into
    # the pallas_call input instead of materializing a padded copy in HBM.
    b_pad = pl.cdiv(b, _SUBLANE) * _SUBLANE
    x = features.astype(w_prepped.dtype)        # bf16 cast only in v5e mode
    if b_pad != b:
        x = jnp.zeros((b_pad, in_f), x.dtype).at[:b, :].set(x)

    flops = 2 * b_pad * in_f * out_pad
    bytes_accessed = (x.dtype.itemsize * b_pad * in_f
                      + w_prepped.dtype.itemsize * rows * out_pad
                      + features.dtype.itemsize * b_pad * out_pad)

    return pl.pallas_call(
        _linear_kernel,
        out_shape=jax.ShapeDtypeStruct((b_pad, out_pad), features.dtype),
        # grid=() : single invocation, all tiles resident in VMEM -- no
        # pipeline prologue/epilogue for this tiny, overhead-bound problem.
        # Scale-up notes (pure overhead at B=8, so comments only):
        #   * B >= ~256 on v7x: grid=(pl.cdiv(Bp, 128),) with batch-blocked
        #     BlockSpecs for x/out and dimension_semantics=("parallel",) to use
        #     both TensorCores; size tiles against v7x's 64 MiB VMEM (32 MiB
        #     scoped default) and set vmem_limit_bytes if tiles are raised.
        #   * Several independent small layers on v6e/v7x: concat their
        #     pre-padded weights along the lane axis (up to 256 lanes) and run
        #     one matmul to fill the 256-wide MXU, splitting outputs after.
        in_specs=[
            pl.BlockSpec(memory_space=pltpu.MemorySpace.VMEM),
            pl.BlockSpec(memory_space=pltpu.MemorySpace.VMEM),
        ],
        out_specs=pl.BlockSpec(memory_space=pltpu.MemorySpace.VMEM),
        compiler_params=pltpu.CompilerParams(
            # One bool per input: the activation producer (batch pad / cast)
            # may fuse into the kernel; the weight slab is a ready-made
            # constant and needs no fusion.
            allow_input_fusion=(True, False)),
        cost_estimate=pl.CostEstimate(
            flops=flops, transcendentals=0, bytes_accessed=bytes_accessed),
    )(x, w_prepped)


# Hot-path entry point: returns the lane-dense [Bp, OUT_pad] slab untouched
# (consumers that can index the padded slab should use this — zero extra ops).
neural_net_forward_slab = jax.jit(_forward_slab_impl)


@functools.partial(jax.jit, static_argnames=("out_features",))
def neural_net_forward(features, w_prepped, out_features):
    """Logical-shape forward: [B, out_features].

    The final slice runs inside the same jitted executable as the pallas_call
    (it fuses with the slab copy-out), so there is no extra eager dispatch and
    the kernel's stores remain unmasked lane-dense vst's.
    """
    slab = _forward_slab_impl(features, w_prepped)
    return slab[: features.shape[0], :out_features]


if __name__ == "__main__":
    # Shapes implied by the module instantiation: nn.Linear(32, 32), batch=8.
    B, IN, OUT = 8, 32, 32

    key = jax.random.PRNGKey(0)
    k_x, k_w, k_b = jax.random.split(key, 3)

    x = jax.random.normal(k_x, (B, IN), dtype=jnp.float32)
    bound = 1.0 / (IN ** 0.5)
    weight = jax.random.uniform(k_w, (OUT, IN), minval=-bound, maxval=bound,
                                dtype=jnp.float32)
    bias = jax.random.uniform(k_b, (OUT,), minval=-bound, maxval=bound,
                              dtype=jnp.float32)

    # One-time parameter prep (transpose + lane-pad + bias fold) happens
    # outside the forward path.  On v5e: prepare_params(weight, bias,
    # operand_dtype=jnp.bfloat16) and loosen the check tolerance accordingly.
    w_p = jax.block_until_ready(prepare_params(weight, bias))

    out = neural_net_forward(x, w_p, out_features=OUT)
    out = jax.block_until_ready(out)

    # Correctness check against the plain-JAX reference of the same forward.
    ref = x @ weight.T + bias
    assert out.shape == (B, OUT)
    assert jnp.allclose(out, ref, atol=1e-5, rtol=1e-5)

    print("KERNEL_OK")
</pallas_src>

<mosaic_0001>
module attributes {stable_mosaic.version = 11 : i64} {
  func.func @_linear_kernel(%arg0: memref<8x32xf32, #tpu.memory_space<vmem>>, %arg1: memref<40x128xf32, #tpu.memory_space<vmem>>, %arg2: memref<8x128xf32, #tpu.memory_space<vmem>>) attributes {dimension_semantics = [], scalar_prefetch = 0 : i64, scratch_operands = 0 : i64, tpu.core_type = #tpu.core_type<tc>} {
    %c0 = arith.constant 0 : index
    %c0_0 = arith.constant 0 : index
    %0 = vector.load %arg0[%c0, %c0_0] : memref<8x32xf32, #tpu.memory_space<vmem>>, vector<8x32xf32>
    %c0_1 = arith.constant 0 : index
    %c0_2 = arith.constant 0 : index
    %1 = vector.load %arg1[%c0_1, %c0_2] : memref<40x128xf32, #tpu.memory_space<vmem>>, vector<32x128xf32>
    %cst = arith.constant dense<0.000000e+00> : vector<8x128xf32>
    %2 = tpu.matmul %0, %1, %cst {dimension_numbers = #tpu.dot_dimension_numbers<[1], [0], [0], [1], [0, 0, 1, 1], [], []>} : vector<8x32xf32>, vector<32x128xf32>, vector<8x128xf32> -> vector<8x128xf32>
    %c32 = arith.constant 32 : index
    %c0_3 = arith.constant 0 : index
    %3 = vector.load %arg1[%c32, %c0_3] : memref<40x128xf32, #tpu.memory_space<vmem>>, vector<1x128xf32>
    %4 = vector.broadcast %3 : vector<1x128xf32> to vector<8x128xf32>
    %5 = arith.addf %2, %4 : vector<8x128xf32>
    %c0_4 = arith.constant 0 : index
    %c0_5 = arith.constant 0 : index
    %6 = vector.load %arg2[%c0_4, %c0_5] : memref<8x128xf32, #tpu.memory_space<vmem>>, vector<8x128xf32>
    tpu.vector_store %arg2[%c0_4, %c0_5], %5 {strides = array<i32>} : memref<8x128xf32, #tpu.memory_space<vmem>>, vector<8x128xf32>,
    return
  }
}

</mosaic_0001>

<bundles_post_ra>
// kernel: neural_net_forward.1
= control target key start
LH: loop header
LB: loop body
LE: loop exit
PB: predicated region body
PF: predicated region fallthrough
CT: control target
= control target key end

     0   :  { %7 = vsyncpa [#allocation3], 0  ;;  %s309_s0 = inlined_call_operand.hbm [shape: f32[8,32], index: 0, kind: input, shape index: {}]   ;;  %s310_s1 = inlined_call_operand.hbm [shape: f32[40,128], index: 1, kind: input, shape index: {}]   ;;  %s311_s2 = inlined_call_operand.hbm [shape: f32[8,128], index: 2, kind: output, shape index: {}]  }
   0x1   :  { %8 = vsyncpa [#allocation6], 0 }
   0x2   :  { %9 = vsyncpa [#allocation4], 0  ;;  %s243_s9 = smov [#allocation2]   ;;  %s244_s11 = smov [#allocation5]  }
   0x3   :  { %s16_s10 = sshll.u32 %s243_s9, 4  ;;  %s25_s12 = sshll.u32 %s244_s11, 4  ;;  %s17_s10 = int_to_ptr.vmem [resolvable:$true] %s16_s10  ;;  %s266_s12 = int_to_ptr.vmem [resolvable:$true] %s25_s12 }
   0x4   :  { %s171_s15 = scalar_lea.hbm %s309_s0, 128 }
   0x5   :  { %p172_p0 = scmp.ne.s32.totalorder %s309_s0, %s171_s15  ;;  %p175_p1 = scmp.lt.u32.totalorder %s171_s15, %s309_s0 }
   0x7   :  { %p177_p2 = pnand %p175_p1, %p172_p0 }
   0x9   :  { %180 = shalt.err (!%p177_p2)
}
   0xa   :  { %s181_s20 = scalar_lea.vmem %s17_s10, 128  ;;  %p186_p4 = scmp.lt.s32.totalorder %s17_s10, %s17_s10 }
   0xb   :  { %p182_p3 = scmp.ne.s32.totalorder %s17_s10, %s181_s20  ;;  %p187_p5 = scmp.lt.s32.totalorder %s181_s20, %s181_s20 }
   0xd   :  { %p188_p6 = por %p187_p5, %p186_p4 }
   0xf   :  { %p189_p7 = pnand %p188_p6, %p182_p3 }
  0x11   :  { %192 = shalt.err (!%p189_p7)
}
  0x12   :  { %19 = dma.hbm_to_vmem [thread:$0]  %s309_s0, 128, %s17_s10, [#allocation3]  }
  0x13   :  { %s193_s25 = scalar_lea.hbm %s310_s1, 640 }
  0x14   :  { %p194_p8 = scmp.ne.s32.totalorder %s310_s1, %s193_s25  ;;  %p197_p9 = scmp.lt.u32.totalorder %s193_s25, %s310_s1 }
  0x16   :  { %p199_p10 = pnand %p197_p9, %p194_p8 }
  0x18   :  { %202 = shalt.err (!%p199_p10)
}
  0x19   :  { %s203_s30 = scalar_lea.vmem %s266_s12, 640  ;;  %p208_p12 = scmp.lt.s32.totalorder %s266_s12, %s266_s12 }
  0x1a   :  { %p204_p11 = scmp.ne.s32.totalorder %s266_s12, %s203_s30  ;;  %p209_p13 = scmp.lt.s32.totalorder %s203_s30, %s203_s30 }
  0x1c   :  { %p210_p0 = por %p209_p13, %p208_p12 }
  0x1e   :  { %p211_p1 = pnand %p210_p0, %p204_p11 }
  0x20   :  { %214 = shalt.err (!%p211_p1)
}
  0x21   :  { %s245_s0 = smov 128   ;;  %s246_s3 = smov 8  }
  0x22   :  { %31 = dma.hbm_to_vmem [thread:$0]  %s310_s1, 640, %s266_s12, [#allocation6], %s245_s0, %s245_s0, %s246_s3  }
  0x23   :  { %237 = dma.done.wait [#allocation3], 128  }
  0x24   :  { %238 = vsyncadd [#allocation3], 4294967168 }
  0x25   :  { %239 = dma.done.wait [#allocation6], 640  }
  0x26   :  { %240 = vsyncadd [#allocation6], 4294966656  ;;  %v247_v0 = vmov 0.0|0.0   ;;  %vm248_vm0 = vmmov 0   ;;  %v249_v1 = vmov 0.0   ;;  %v39_v2 = vld [vmem:[#allocation5] sm:$0xff] }
  0x27   :  { %157 = vmatprep.subr.bf16.mxu0 %v247_v0  ;;  %154 = vmatprep.mubr.msk.f32.mxu0 %vm248_vm0, %v249_v1  ;;  %v40_v3 = vld [vmem:[#allocation5 + $0x8] sm:$0xff]  ;;  %v41_v4 = vld [vmem:[#allocation5 + $0x10] sm:$0xff]  ;;  %v42_v6 = vld [vmem:[#allocation5 + $0x18] sm:$0xff]  ;;  %vm48_vm1 = vcmask 261120   ;;  %s250_s1 = smov [#allocation7]  }
  0x28   :  { %v158_v5 = vpack.c.bf16 %v40_v3, %v39_v2  ;;  %v161_v7 = vpack.c.bf16 %v42_v6, %v41_v4  ;;  %v38_v8 = vld [vmem:[#allocation2] sm:$0xff]  ;;  %v139_v9 = vld [vmem:[#allocation5 + $0x20] ss:$0 sm:$0xff]  ;;  %s129_s6 = sshll.u32 %s250_s1, 4  ;;  %s130_s6 = int_to_ptr.vmem [resolvable:$true] %s129_s6 }
  0x29   :  { %s215_s7 = scalar_lea.vmem %s130_s6, 128  ;;  %p220_p3 = scmp.lt.s32.totalorder %s130_s6, %s130_s6 }
  0x2a   :  { %159 = vmatpush3.bf16.msra.mxu0 %v158_v5  ;;  %p216_p2 = scmp.ne.s32.totalorder %s130_s6, %s215_s7  ;;  %p221_p4 = scmp.lt.s32.totalorder %s215_s7, %s215_s7 }
  0x2b   :  { %160 = vmatprep.subr.bf16.mxu0 %v247_v0 }
  0x2c   :  { %p222_p5 = por %p221_p4, %p220_p3 }
  0x2e   :  { %162 = vmatpush3.bf16.msra.mxu0 %v161_v7  ;;  %p223_p6 = pnand %p222_p5, %p216_p2 }
  0x31   :  { %155 = vmatmul.mubr.msk.f32.vlgmr.msra.gmra.mrb[0].mxu0 %vm48_vm1, %v38_v8 }
 0x104   :  { %v118_v10 = vpop.f32.mrb[0].mxu0 }
 0x105   :  { %v119_v11 = vadd.f32 %v139_v9, %v118_v10  ;;  %v156_v12 = vpop.f32.mrb[1].mxu0 }
 0x107   :  { %122 = vst [vmem:[#allocation7] sm:$0xff] %v119_v11 }
 0x108   :  { %226 = shalt.err (!%p223_p6)
}
 0x109   :  { %s227_s10 = scalar_lea.hbm %s311_s2, 128 }
 0x10a   :  { %p228_p7 = scmp.ne.s32.totalorder %s311_s2, %s227_s10  ;;  %p231_p8 = scmp.lt.u32.totalorder %s227_s10, %s311_s2 }
 0x10c   :  { %p233_p9 = pnand %p231_p8, %p228_p7 }
 0x10e   :  { %236 = shalt.err (!%p233_p9)
}
 0x10f   :  { %132 = dma.vmem_to_hbm [thread:$0]  %s130_s6, 128, %s311_s2, [#allocation4]  }
 0x110   :  { %241 = dma.done.wait [#allocation4], 128  }
 0x111   :  { %242 = vsyncadd [#allocation4], 4294967168 }
 0x112   :  { %136 = vsyncpa [#allocation3], 1 }
 0x113   :  { %137 = vsyncpa [#allocation6], 1 }
 0x114   :  { %138 = vsyncpa [#allocation4], 1 }

</bundles_post_ra>
